<compile_context>
chip_gen: v5e
topology: v5e:2x2
jax: 0.10.0
libtpu: 0.0.40
codegen_flags: <defaults>
</compile_context>

<pallas_src>
import jax
import jax.numpy as jnp
from jax.experimental import pallas as pl
from jax.experimental.pallas import tpu as pltpu

LANE = 128     # lane width / MXU edge alignment
SUBLANE = 8    # f32 sublane granularity


def _round_up(v, m):
    return (v + m - 1) // m * m


def _vmem_capacity_bytes():
    """Per-core VMEM capacity; conservative 64 MiB fallback (fits every gen)."""
    try:
        info = pltpu.get_tpu_info()
        for name in ("vmem_capacity_bytes", "vmem_size_bytes", "vmem_bytes"):
            v = getattr(info, name, None)
            if v:
                return int(v)
    except Exception:
        pass
    return 64 << 20


def _per_row_bytes(d_pad, h_pad):
    # Per batch-row VMEM bytes: double-buffered bf16 input tile, double-buffered
    # f32 output tile, live bf16 activation slabs, one f32 MXU accumulator slab.
    return (2 * 2 * d_pad) + (2 * 4 * d_pad) + (3 * 2 * h_pad) + (4 * h_pad)


def _choose_tb(B, d_pad, h_pad, weight_bytes, vmem_budget, block_b_cap):
    """Largest batch tile whose resident footprint fits the per-gen VMEM budget."""
    headroom = 4 << 20
    per_row = _per_row_bytes(d_pad, h_pad)
    avail = vmem_budget - weight_bytes - headroom
    if avail < per_row * SUBLANE:
        # TODO(synk): weight-tiled (output-feature grid axis) fallback when the six
        # resident matrices alone exceed the per-generation VMEM budget.
        max_rows = SUBLANE
    else:
        max_rows = avail // per_row
    tb = min(block_b_cap, max_rows)
    # Keep >= 2 grid steps for large batches (v7x 2 TensorCores + DMA/compute
    # overlap), without shrinking the MXU M tile below 128 rows.
    if B >= 2 * LANE:
        tb = min(tb, max(LANE, _round_up(-(-B // 2), LANE)))
    # MXU-edge aligned M when the batch permits, otherwise sublane aligned.
    if B >= LANE and tb >= LANE:
        tb = (tb // LANE) * LANE
    else:
        tb = _round_up(min(tb, B), SUBLANE)
    return max(SUBLANE, int(tb))


def mae_kernel(x_ref,
               w1, b1, w2, b2, w3, b3,      # encoder params (bf16 W, f32 b)
               w4, b4, w5, b5, w6, b6,      # decoder params
               out_ref):
    h = x_ref[...]                          # [TB, D_pad] bf16

    def layer(h_bf16, w_ref, b_ref, relu):
        # bf16 operands on the MXU, f32 accumulation; bias + ReLU in f32 on VPU.
        acc = jnp.dot(h_bf16, w_ref[...], preferred_element_type=jnp.float32)
        acc = acc + b_ref[...]
        if relu:
            # Round straight back to bf16 (same value the next dot would use);
            # halves the live intermediate slab bytes and vld/vst traffic.
            return jnp.maximum(acc, 0.0).astype(jnp.bfloat16)
        return acc

    h = layer(h, w1, b1, True)
    h = layer(h, w2, b2, True)
    h = layer(h, w3, b3, True)
    h = layer(h, w4, b4, True)
    h = layer(h, w5, b5, True)
    out_ref[...] = layer(h, w6, b6, False).astype(out_ref.dtype)   # no ReLU


def mae_forward(x, kparams, *, block_b=2048):
    """x: [B, D] f32. kparams: packed tuple (w1,b1,...,w6,b6); w bf16 [in_pad,out_pad],
    b f32 [1,out_pad], padded dims are multiples of 128."""
    B, D = x.shape
    d_pad, h_pad = kparams[0].shape          # w1 is [D_pad, H_pad]

    weight_bytes = sum(int(p.size) * p.dtype.itemsize for p in kparams)
    capacity = _vmem_capacity_bytes()
    vmem_budget = min(capacity - (16 << 20), int(capacity * 0.8))

    tb = _choose_tb(B, d_pad, h_pad, weight_bytes, vmem_budget, block_b)
    b_pad = _round_up(B, tb)

    # bf16 input: the kernel rounded x to bf16 before the first dot anyway.
    x_p = x.astype(jnp.bfloat16)
    if (b_pad, d_pad) != (B, D):             # skip pad materialization when unneeded
        x_p = jnp.pad(x_p, ((0, b_pad - B), (0, d_pad - D)))

    grid = (b_pad // tb,)

    x_spec = pl.BlockSpec((tb, d_pad), lambda i: (i, 0))
    out_spec = pl.BlockSpec((tb, d_pad), lambda i: (i, 0))
    # Whole-array VMEM placement: single-buffered, DMA'd once, resident for the
    # entire grid while activation tiles software-pipeline around them.
    param_specs = [pl.BlockSpec(memory_space=pltpu.MemorySpace.VMEM)
                   for _ in kparams]

    # Advisory cost estimate (6 linears: D->H, H->H, H->D, D->H, H->H, H->D).
    flops = 2 * b_pad * (4 * d_pad * h_pad + 2 * h_pad * h_pad)
    bytes_accessed = (x_p.size * x_p.dtype.itemsize
                      + weight_bytes
                      + b_pad * d_pad * 4)

    footprint = weight_bytes + _per_row_bytes(d_pad, h_pad) * tb + (8 << 20)
    vmem_limit = int(min(capacity, max(footprint, 32 << 20)))

    out = pl.pallas_call(
        mae_kernel,
        out_shape=jax.ShapeDtypeStruct((b_pad, d_pad), jnp.float32),
        grid=grid,
        in_specs=[x_spec] + param_specs,
        out_specs=out_spec,
        compiler_params=pltpu.CompilerParams(
            dimension_semantics=("parallel",),
            vmem_limit_bytes=vmem_limit),
        cost_estimate=pl.CostEstimate(
            flops=flops, transcendentals=0, bytes_accessed=bytes_accessed),
    )(x_p, *kparams)

    return out[:B, :D]


def init_params(key, input_dim):
    """PyTorch-layout f32 params: list of (W [out,in], b [out]) in forward order."""
    d, h = input_dim, input_dim * 2
    layer_shapes = [(h, d), (h, h), (d, h), (h, d), (h, h), (d, h)]  # (out, in)
    params = []
    for out_f, in_f in layer_shapes:
        key, kw, kb = jax.random.split(key, 3)
        bound = 1.0 / float(in_f) ** 0.5     # PyTorch default uniform init scale
        w = jax.random.uniform(kw, (out_f, in_f), jnp.float32, -bound, bound)
        b = jax.random.uniform(kb, (out_f,), jnp.float32, -bound, bound)
        params.append((w, b))
    return tuple(params)


def pack_params(params_f32):
    """Transpose to [in,out], zero-pad both dims to 128-multiples, cast W to bf16.
    Biases stay f32 as [1, out_pad]. Zero padding preserves the forward math."""
    packed = []
    for w, b in params_f32:
        out_f, in_f = w.shape
        in_p, out_p = _round_up(in_f, LANE), _round_up(out_f, LANE)
        wt = jnp.zeros((in_p, out_p), jnp.bfloat16)
        wt = wt.at[:in_f, :out_f].set(w.T.astype(jnp.bfloat16))
        bp = jnp.zeros((1, out_p), jnp.float32)
        bp = bp.at[0, :out_f].set(b)
        packed.append(wt)
        packed.append(bp)
    return tuple(packed)


def mae_reference(x, params_f32, matmul_dtype=jnp.bfloat16):
    """Pure-JAX reference; matmul_dtype=bf16 matches the kernel's numerics,
    f32 matches the original PyTorch module exactly."""
    h = x
    n = len(params_f32)
    for idx, (w, b) in enumerate(params_f32):
        acc = jnp.dot(h.astype(matmul_dtype), w.T.astype(matmul_dtype),
                      preferred_element_type=jnp.float32) + b
        h = acc if idx == n - 1 else jnp.maximum(acc, 0.0)
    return h


if __name__ == "__main__":
    key = jax.random.PRNGKey(0)
    key, kx, kp = jax.random.split(key, 3)

    batch, input_dim = 8, 32
    x = jax.random.normal(kx, (batch, input_dim), jnp.float32)
    params_f32 = init_params(kp, input_dim)
    kparams = pack_params(params_f32)

    out = mae_forward(x, kparams)
    out = jax.block_until_ready(out)

    assert out.shape == (batch, input_dim)
    # Tight check against the bf16-matmul reference (same numerics as the kernel).
    ref_bf16 = mae_reference(x, params_f32, matmul_dtype=jnp.bfloat16)
    assert jnp.allclose(out, ref_bf16, atol=2e-3, rtol=2e-3)
    # Loose semantic check against the exact f32 PyTorch-equivalent forward.
    ref_f32 = mae_reference(x, params_f32, matmul_dtype=jnp.float32)
    assert jnp.allclose(out, ref_f32, atol=1e-1, rtol=1e-1)

    print("KERNEL_OK")
</pallas_src>

<mosaic_0001>
module attributes {stable_mosaic.version = 11 : i64} {
  func.func @mae_kernel(%arg0: i32, %arg1: memref<8x128xbf16, #tpu.memory_space<vmem>>, %arg2: memref<128x128xbf16, #tpu.memory_space<vmem>>, %arg3: memref<1x128xf32, #tpu.memory_space<vmem>>, %arg4: memref<128x128xbf16, #tpu.memory_space<vmem>>, %arg5: memref<1x128xf32, #tpu.memory_space<vmem>>, %arg6: memref<128x128xbf16, #tpu.memory_space<vmem>>, %arg7: memref<1x128xf32, #tpu.memory_space<vmem>>, %arg8: memref<128x128xbf16, #tpu.memory_space<vmem>>, %arg9: memref<1x128xf32, #tpu.memory_space<vmem>>, %arg10: memref<128x128xbf16, #tpu.memory_space<vmem>>, %arg11: memref<1x128xf32, #tpu.memory_space<vmem>>, %arg12: memref<128x128xbf16, #tpu.memory_space<vmem>>, %arg13: memref<1x128xf32, #tpu.memory_space<vmem>>, %arg14: memref<8x128xf32, #tpu.memory_space<vmem>>) attributes {dimension_semantics = [#tpu.dimension_semantics<parallel>], iteration_bounds = array<i64: 1>, scalar_prefetch = 0 : i64, scratch_operands = 0 : i64, tpu.core_type = #tpu.core_type<tc>, window_params = [{transform_indices = @transform_0, window_bounds = array<i64: 8, 128>}, {pipeline_mode = #tpu.pipeline_mode<synchronous>, transform_indices = @transform_1, window_bounds = array<i64: 128, 128>}, {pipeline_mode = #tpu.pipeline_mode<synchronous>, transform_indices = @transform_2, window_bounds = array<i64: 1, 128>}, {pipeline_mode = #tpu.pipeline_mode<synchronous>, transform_indices = @transform_3, window_bounds = array<i64: 128, 128>}, {pipeline_mode = #tpu.pipeline_mode<synchronous>, transform_indices = @transform_4, window_bounds = array<i64: 1, 128>}, {pipeline_mode = #tpu.pipeline_mode<synchronous>, transform_indices = @transform_5, window_bounds = array<i64: 128, 128>}, {pipeline_mode = #tpu.pipeline_mode<synchronous>, transform_indices = @transform_6, window_bounds = array<i64: 1, 128>}, {pipeline_mode = #tpu.pipeline_mode<synchronous>, transform_indices = @transform_7, window_bounds = array<i64: 128, 128>}, {pipeline_mode = #tpu.pipeline_mode<synchronous>, transform_indices = @transform_8, window_bounds = array<i64: 1, 128>}, {pipeline_mode = #tpu.pipeline_mode<synchronous>, transform_indices = @transform_9, window_bounds = array<i64: 128, 128>}, {pipeline_mode = #tpu.pipeline_mode<synchronous>, transform_indices = @transform_10, window_bounds = array<i64: 1, 128>}, {pipeline_mode = #tpu.pipeline_mode<synchronous>, transform_indices = @transform_11, window_bounds = array<i64: 128, 128>}, {pipeline_mode = #tpu.pipeline_mode<synchronous>, transform_indices = @transform_12, window_bounds = array<i64: 1, 128>}, {transform_indices = @transform_13, window_bounds = array<i64: 8, 128>}]} {
    %c0 = arith.constant 0 : index
    %c0_0 = arith.constant 0 : index
    %0 = vector.load %arg1[%c0, %c0_0] : memref<8x128xbf16, #tpu.memory_space<vmem>>, vector<8x128xbf16>
    %c0_1 = arith.constant 0 : index
    %c0_2 = arith.constant 0 : index
    %1 = vector.load %arg2[%c0_1, %c0_2] : memref<128x128xbf16, #tpu.memory_space<vmem>>, vector<128x128xbf16>
    %cst = arith.constant dense<0.000000e+00> : vector<8x128xf32>
    %2 = tpu.matmul %0, %1, %cst {dimension_numbers = #tpu.dot_dimension_numbers<[1], [0], [0], [1], [0, 0, 1, 1], [], []>} : vector<8x128xbf16>, vector<128x128xbf16>, vector<8x128xf32> -> vector<8x128xf32>
    %c0_3 = arith.constant 0 : index
    %c0_4 = arith.constant 0 : index
    %3 = vector.load %arg3[%c0_3, %c0_4] : memref<1x128xf32, #tpu.memory_space<vmem>>, vector<1x128xf32>
    %4 = vector.broadcast %3 : vector<1x128xf32> to vector<8x128xf32>
    %5 = arith.addf %2, %4 : vector<8x128xf32>
    %cst_5 = arith.constant 0.000000e+00 : f32
    %6 = vector.broadcast %cst_5 : f32 to vector<8x128xf32>
    %7 = arith.maximumf %5, %6 : vector<8x128xf32>
    %8 = arith.truncf %7 : vector<8x128xf32> to vector<8x128xbf16>
    %c0_6 = arith.constant 0 : index
    %c0_7 = arith.constant 0 : index
    %9 = vector.load %arg4[%c0_6, %c0_7] : memref<128x128xbf16, #tpu.memory_space<vmem>>, vector<128x128xbf16>
    %cst_8 = arith.constant dense<0.000000e+00> : vector<8x128xf32>
    %10 = tpu.matmul %8, %9, %cst_8 {dimension_numbers = #tpu.dot_dimension_numbers<[1], [0], [0], [1], [0, 0, 1, 1], [], []>} : vector<8x128xbf16>, vector<128x128xbf16>, vector<8x128xf32> -> vector<8x128xf32>
    %c0_9 = arith.constant 0 : index
    %c0_10 = arith.constant 0 : index
    %11 = vector.load %arg5[%c0_9, %c0_10] : memref<1x128xf32, #tpu.memory_space<vmem>>, vector<1x128xf32>
    %12 = vector.broadcast %11 : vector<1x128xf32> to vector<8x128xf32>
    %13 = arith.addf %10, %12 : vector<8x128xf32>
    %cst_11 = arith.constant 0.000000e+00 : f32
    %14 = vector.broadcast %cst_11 : f32 to vector<8x128xf32>
    %15 = arith.maximumf %13, %14 : vector<8x128xf32>
    %16 = arith.truncf %15 : vector<8x128xf32> to vector<8x128xbf16>
    %c0_12 = arith.constant 0 : index
    %c0_13 = arith.constant 0 : index
    %17 = vector.load %arg6[%c0_12, %c0_13] : memref<128x128xbf16, #tpu.memory_space<vmem>>, vector<128x128xbf16>
    %cst_14 = arith.constant dense<0.000000e+00> : vector<8x128xf32>
    %18 = tpu.matmul %16, %17, %cst_14 {dimension_numbers = #tpu.dot_dimension_numbers<[1], [0], [0], [1], [0, 0, 1, 1], [], []>} : vector<8x128xbf16>, vector<128x128xbf16>, vector<8x128xf32> -> vector<8x128xf32>
    %c0_15 = arith.constant 0 : index
    %c0_16 = arith.constant 0 : index
    %19 = vector.load %arg7[%c0_15, %c0_16] : memref<1x128xf32, #tpu.memory_space<vmem>>, vector<1x128xf32>
    %20 = vector.broadcast %19 : vector<1x128xf32> to vector<8x128xf32>
    %21 = arith.addf %18, %20 : vector<8x128xf32>
    %cst_17 = arith.constant 0.000000e+00 : f32
    %22 = vector.broadcast %cst_17 : f32 to vector<8x128xf32>
    %23 = arith.maximumf %21, %22 : vector<8x128xf32>
    %24 = arith.truncf %23 : vector<8x128xf32> to vector<8x128xbf16>
    %c0_18 = arith.constant 0 : index
    %c0_19 = arith.constant 0 : index
    %25 = vector.load %arg8[%c0_18, %c0_19] : memref<128x128xbf16, #tpu.memory_space<vmem>>, vector<128x128xbf16>
    %cst_20 = arith.constant dense<0.000000e+00> : vector<8x128xf32>
    %26 = tpu.matmul %24, %25, %cst_20 {dimension_numbers = #tpu.dot_dimension_numbers<[1], [0], [0], [1], [0, 0, 1, 1], [], []>} : vector<8x128xbf16>, vector<128x128xbf16>, vector<8x128xf32> -> vector<8x128xf32>
    %c0_21 = arith.constant 0 : index
    %c0_22 = arith.constant 0 : index
    %27 = vector.load %arg9[%c0_21, %c0_22] : memref<1x128xf32, #tpu.memory_space<vmem>>, vector<1x128xf32>
    %28 = vector.broadcast %27 : vector<1x128xf32> to vector<8x128xf32>
    %29 = arith.addf %26, %28 : vector<8x128xf32>
    %cst_23 = arith.constant 0.000000e+00 : f32
    %30 = vector.broadcast %cst_23 : f32 to vector<8x128xf32>
    %31 = arith.maximumf %29, %30 : vector<8x128xf32>
    %32 = arith.truncf %31 : vector<8x128xf32> to vector<8x128xbf16>
    %c0_24 = arith.constant 0 : index
    %c0_25 = arith.constant 0 : index
    %33 = vector.load %arg10[%c0_24, %c0_25] : memref<128x128xbf16, #tpu.memory_space<vmem>>, vector<128x128xbf16>
    %cst_26 = arith.constant dense<0.000000e+00> : vector<8x128xf32>
    %34 = tpu.matmul %32, %33, %cst_26 {dimension_numbers = #tpu.dot_dimension_numbers<[1], [0], [0], [1], [0, 0, 1, 1], [], []>} : vector<8x128xbf16>, vector<128x128xbf16>, vector<8x128xf32> -> vector<8x128xf32>
    %c0_27 = arith.constant 0 : index
    %c0_28 = arith.constant 0 : index
    %35 = vector.load %arg11[%c0_27, %c0_28] : memref<1x128xf32, #tpu.memory_space<vmem>>, vector<1x128xf32>
    %36 = vector.broadcast %35 : vector<1x128xf32> to vector<8x128xf32>
    %37 = arith.addf %34, %36 : vector<8x128xf32>
    %cst_29 = arith.constant 0.000000e+00 : f32
    %38 = vector.broadcast %cst_29 : f32 to vector<8x128xf32>
    %39 = arith.maximumf %37, %38 : vector<8x128xf32>
    %40 = arith.truncf %39 : vector<8x128xf32> to vector<8x128xbf16>
    %c0_30 = arith.constant 0 : index
    %c0_31 = arith.constant 0 : index
    %41 = vector.load %arg12[%c0_30, %c0_31] : memref<128x128xbf16, #tpu.memory_space<vmem>>, vector<128x128xbf16>
    %cst_32 = arith.constant dense<0.000000e+00> : vector<8x128xf32>
    %42 = tpu.matmul %40, %41, %cst_32 {dimension_numbers = #tpu.dot_dimension_numbers<[1], [0], [0], [1], [0, 0, 1, 1], [], []>} : vector<8x128xbf16>, vector<128x128xbf16>, vector<8x128xf32> -> vector<8x128xf32>
    %c0_33 = arith.constant 0 : index
    %c0_34 = arith.constant 0 : index
    %43 = vector.load %arg13[%c0_33, %c0_34] : memref<1x128xf32, #tpu.memory_space<vmem>>, vector<1x128xf32>
    %44 = vector.broadcast %43 : vector<1x128xf32> to vector<8x128xf32>
    %45 = arith.addf %42, %44 : vector<8x128xf32>
    %c0_35 = arith.constant 0 : index
    %c0_36 = arith.constant 0 : index
    %46 = vector.load %arg14[%c0_35, %c0_36] : memref<8x128xf32, #tpu.memory_space<vmem>>, vector<8x128xf32>
    tpu.vector_store %arg14[%c0_35, %c0_36], %45 {strides = array<i32>} : memref<8x128xf32, #tpu.memory_space<vmem>>, vector<8x128xf32>,
    return
  }
  func.func @transform_0(%arg0: i32) -> (i32, i32) {
    %c0_i32 = arith.constant 0 : i32
    %c0_i32_0 = arith.constant 0 : i32
    return %arg0, %c0_i32 : i32, i32
  }
  func.func @transform_1(%arg0: i32) -> (i32, i32) {
    %c0_i32 = arith.constant 0 : i32
    %c0_i32_0 = arith.constant 0 : i32
    %c0_i32_1 = arith.constant 0 : i32
    return %c0_i32, %c0_i32_0 : i32, i32
  }
  func.func @transform_2(%arg0: i32) -> (i32, i32) {
    %c0_i32 = arith.constant 0 : i32
    %c0_i32_0 = arith.constant 0 : i32
    %c0_i32_1 = arith.constant 0 : i32
    return %c0_i32, %c0_i32_0 : i32, i32
  }
  func.func @transform_3(%arg0: i32) -> (i32, i32) {
    %c0_i32 = arith.constant 0 : i32
    %c0_i32_0 = arith.constant 0 : i32
    %c0_i32_1 = arith.constant 0 : i32
    return %c0_i32, %c0_i32_0 : i32, i32
  }
  func.func @transform_4(%arg0: i32) -> (i32, i32) {
    %c0_i32 = arith.constant 0 : i32
    %c0_i32_0 = arith.constant 0 : i32
    %c0_i32_1 = arith.constant 0 : i32
    return %c0_i32, %c0_i32_0 : i32, i32
  }
  func.func @transform_5(%arg0: i32) -> (i32, i32) {
    %c0_i32 = arith.constant 0 : i32
    %c0_i32_0 = arith.constant 0 : i32
    %c0_i32_1 = arith.constant 0 : i32
    return %c0_i32, %c0_i32_0 : i32, i32
  }
  func.func @transform_6(%arg0: i32) -> (i32, i32) {
    %c0_i32 = arith.constant 0 : i32
    %c0_i32_0 = arith.constant 0 : i32
    %c0_i32_1 = arith.constant 0 : i32
    return %c0_i32, %c0_i32_0 : i32, i32
  }
  func.func @transform_7(%arg0: i32) -> (i32, i32) {
    %c0_i32 = arith.constant 0 : i32
    %c0_i32_0 = arith.constant 0 : i32
    %c0_i32_1 = arith.constant 0 : i32
    return %c0_i32, %c0_i32_0 : i32, i32
  }
  func.func @transform_8(%arg0: i32) -> (i32, i32) {
    %c0_i32 = arith.constant 0 : i32
    %c0_i32_0 = arith.constant 0 : i32
    %c0_i32_1 = arith.constant 0 : i32
    return %c0_i32, %c0_i32_0 : i32, i32
  }
  func.func @transform_9(%arg0: i32) -> (i32, i32) {
    %c0_i32 = arith.constant 0 : i32
    %c0_i32_0 = arith.constant 0 : i32
    %c0_i32_1 = arith.constant 0 : i32
    return %c0_i32, %c0_i32_0 : i32, i32
  }
  func.func @transform_10(%arg0: i32) -> (i32, i32) {
    %c0_i32 = arith.constant 0 : i32
    %c0_i32_0 = arith.constant 0 : i32
    %c0_i32_1 = arith.constant 0 : i32
    return %c0_i32, %c0_i32_0 : i32, i32
  }
  func.func @transform_11(%arg0: i32) -> (i32, i32) {
    %c0_i32 = arith.constant 0 : i32
    %c0_i32_0 = arith.constant 0 : i32
    %c0_i32_1 = arith.constant 0 : i32
    return %c0_i32, %c0_i32_0 : i32, i32
  }
  func.func @transform_12(%arg0: i32) -> (i32, i32) {
    %c0_i32 = arith.constant 0 : i32
    %c0_i32_0 = arith.constant 0 : i32
    %c0_i32_1 = arith.constant 0 : i32
    return %c0_i32, %c0_i32_0 : i32, i32
  }
  func.func @transform_13(%arg0: i32) -> (i32, i32) {
    %c0_i32 = arith.constant 0 : i32
    %c0_i32_0 = arith.constant 0 : i32
    return %arg0, %c0_i32 : i32, i32
  }
}

</mosaic_0001>

<bundles_post_ra>
// kernel: tpu_custom_call.1
= control target key start
LH: loop header
LB: loop body
LE: loop exit
PB: predicated region body
PF: predicated region fallthrough
CT: control target
= control target key end

     0   :  { %18 = vsyncpa [#allocation3], 0  ;;  %s1268_s0 = inlined_call_operand.hbm [shape: bf16[8,128], index: 0, kind: input, shape index: {}]   ;;  %s1269_s1 = inlined_call_operand.hbm [shape: bf16[128,128], index: 1, kind: input, shape index: {}]   ;;  %s1270_s2 = inlined_call_operand.vmem [shape: f32[1,128], index: 2, kind: input, shape index: {}]   ;;  %s1271_s3 = inlined_call_operand.hbm [shape: bf16[128,128], index: 3, kind: input, shape index: {}]   ;;  %s1272_s4 = inlined_call_operand.vmem [shape: f32[1,128], index: 4, kind: input, shape index: {}]   ;;  %s1273_s5 = inlined_call_operand.hbm [shape: bf16[128,128], index: 5, kind: input, shape index: {}]   ;;  %s1274_s6 = inlined_call_operand.vmem [shape: f32[1,128], index: 6, kind: input, shape index: {}]   ;;  %s1275_s7 = inlined_call_operand.hbm [shape: bf16[128,128], index: 7, kind: input, shape index: {}]   ;;  %s1276_s8 = inlined_call_operand.vmem [shape: f32[1,128], index: 8, kind: input, shape index: {}]   ;;  %s1277_s9 = inlined_call_operand.hbm [shape: bf16[128,128], index: 9, kind: input, shape index: {}]   ;;  %s1278_s10 = inlined_call_operand.vmem [shape: f32[1,128], index: 10, kind: input, shape index: {}]   ;;  %s1279_s11 = inlined_call_operand.hbm [shape: bf16[128,128], index: 11, kind: input, shape index: {}]   ;;  %s1280_s12 = inlined_call_operand.vmem [shape: f32[1,128], index: 12, kind: input, shape index: {}]   ;;  %s1281_s13 = inlined_call_operand.hbm [shape: f32[8,128], index: 13, kind: output, shape index: {}]  }
   0x1   :  { %19 = vsyncpa [#allocation6], 0 }
   0x2   :  { %20 = vsyncpa [#allocation9], 0 }
   0x3   :  { %21 = vsyncpa [#allocation12], 0  ;;  %s38_s27 = sshll.u32 %s1269_s1, 4  ;;  %s39_s27 = int_to_ptr.hbm [resolvable:$true] %s38_s27 }
   0x4   :  { %22 = vsyncpa [#allocation4], 0  ;;  %s1128_s28 = smov [#allocation5]   ;;  %s68_s15 = sshll.u32 %s1273_s5, 4  ;;  %s69_s15 = int_to_ptr.hbm [resolvable:$true] %s68_s15 }
   0x5   :  { %s40_s29 = sshll.u32 %s1128_s28, 4  ;;  %s1129_s16 = smov 64   ;;  %s41_s29 = int_to_ptr.vmem [resolvable:$true] %s40_s29 }
   0x6   :  { %s1130_s17 = smov 4   ;;  %s1131_s18 = smov [#allocation8]  }
   0x7   :  { %46 = dma.hbm_to_vmem [thread:$0]  %s39_s27, 1024, %s41_s29, [#allocation6], %s1129_s16, %s1129_s16, %s1130_s17  }
   0x8   :  { %s70_s19 = sshll.u32 %s1131_s18, 4  ;;  %s98_s21 = sshll.u32 %s1277_s9, 4  ;;  %s71_s19 = int_to_ptr.vmem [resolvable:$true] %s70_s19  ;;  %s99_s21 = int_to_ptr.hbm [resolvable:$true] %s98_s21 }
   0x9   :  { %76 = dma.hbm_to_vmem [thread:$0]  %s69_s15, 1024, %s71_s19, [#allocation9], %s1129_s16, %s1129_s16, %s1130_s17  }
   0xa   :  { %s28_s23 = sshll.u32 %s1268_s0, 4  ;;  %s1132_s24 = smov [#allocation11]   ;;  %s29_s23 = int_to_ptr.hbm [resolvable:$true] %s28_s23 }
   0xb   :  { %s100_s25 = sshll.u32 %s1132_s24, 4  ;;  %s1133_s26 = smov [#allocation2]   ;;  %s101_s25 = int_to_ptr.vmem [resolvable:$true] %s100_s25 }
   0xc   :  { %106 = dma.hbm_to_vmem [thread:$0]  %s99_s21, 1024, %s101_s25, [#allocation12], %s1129_s16, %s1129_s16, %s1130_s17  }
   0xd   :  { %s30_s9 = sshll.u32 %s1133_s26, 4  ;;  %s53_s29 = sshll.u32 %s1271_s3, 4  ;;  %s31_s9 = int_to_ptr.vmem [resolvable:$true] %s30_s9  ;;  %s54_s29 = int_to_ptr.hbm [resolvable:$true] %s53_s29 }
   0xe   :  { %33 = dma.hbm_to_vmem [thread:$0]  %s29_s23, 64, %s31_s9, [#allocation3]  }
   0xf   :  { %s83_s0 = sshll.u32 %s1275_s7, 4  ;;  %s1134_s15 = smov [#allocation7]   ;;  %s84_s0 = int_to_ptr.hbm [resolvable:$true] %s83_s0 }
  0x10   :  { %s55_s18 = sshll.u32 %s1134_s15, 4  ;;  %s1135_s19 = smov [#allocation10]   ;;  %s56_s18 = int_to_ptr.vmem [resolvable:$true] %s55_s18 }
  0x11   :  { %61 = dma.hbm_to_vmem [thread:$0]  %s54_s29, 1024, %s56_s18, [#allocation6], %s1129_s16, %s1129_s16, %s1130_s17  }
  0x12   :  { %s85_s20 = sshll.u32 %s1135_s19, 4  ;;  %s113_s3 = sshll.u32 %s1279_s11, 4  ;;  %s86_s20 = int_to_ptr.vmem [resolvable:$true] %s85_s20  ;;  %s114_s3 = int_to_ptr.hbm [resolvable:$true] %s113_s3 }
  0x13   :  { %91 = dma.hbm_to_vmem [thread:$0]  %s84_s0, 1024, %s86_s20, [#allocation9], %s1129_s16, %s1129_s16, %s1130_s17  }
  0x14   :  { %s1136_s7 = smov [#allocation13]  }
  0x15   :  { %s115_s5 = sshll.u32 %s1136_s7, 4  ;;  %s116_s5 = int_to_ptr.vmem [resolvable:$true] %s115_s5 }
  0x16   :  { %121 = dma.hbm_to_vmem [thread:$0]  %s114_s3, 1024, %s116_s5, [#allocation12], %s1129_s16, %s1129_s16, %s1130_s17  }
  0x17   :  { %1118 = dma.done.wait [#allocation3], 64  }
  0x18   :  { %1119 = vsyncadd [#allocation3], 4294967232 }
  0x19   :  { %1120 = dma.done.wait [#allocation6], 2048  }
  0x1a   :  { %1121 = vsyncadd [#allocation6], 4294965248 }
  0x1b   :  { %1122 = dma.done.wait [#allocation9], 2048  }
  0x1c   :  { %1123 = vsyncadd [#allocation9], 4294965248 }
  0x1d   :  { %1124 = dma.done.wait [#allocation12], 2048  }
  0x1e   :  { %1125 = vsyncadd [#allocation12], 4294965248  ;;  %v869_v0 = vld [vmem:[#allocation5 + $0x38] sm:$0xff]  ;;  %v868_v1 = vld [vmem:[#allocation5 + $0x30] sm:$0xff]  ;;  %s1137_s9 = smov [#allocation14]   ;;  %s657_s30 = sshll.u32 %s1281_s13, 4  ;;  %s658_s30 = int_to_ptr.hbm [resolvable:$true] %s657_s30 }
  0x1f   :  { %221 = vmatpush.bf16.msra.mxu0 %v869_v0  ;;  %v877_v2 = vld [vmem:[#allocation7 + $0x38] sm:$0xff]  ;;  %v867_v3 = vld [vmem:[#allocation5 + $0x28] sm:$0xff]  ;;  %v876_v4 = vld [vmem:[#allocation7 + $0x30] sm:$0xff]  ;;  %s655_s27 = sshll.u32 %s1137_s9, 4  ;;  %s656_s27 = int_to_ptr.vmem [resolvable:$true] %s655_s27 }
  0x20   :  { %304 = vmatpush.bf16.msra.mxu1 %v877_v2  ;;  %v875_v5 = vld [vmem:[#allocation7 + $0x28] sm:$0xff]  ;;  %v866_v6 = vld [vmem:[#allocation5 + $0x20] sm:$0xff]  ;;  %v865_v8 = vld [vmem:[#allocation5 + $0x18] sm:$0xff] }
  0x21   :  { %v874_v7 = vld [vmem:[#allocation7 + $0x20] sm:$0xff]  ;;  %v873_v9 = vld [vmem:[#allocation7 + $0x18] sm:$0xff]  ;;  %v864_v10 = vld [vmem:[#allocation5 + $0x10] sm:$0xff] }
  0x22   :  { %v872_v11 = vld [vmem:[#allocation7 + $0x10] sm:$0xff]  ;;  %v863_v12 = vld [vmem:[#allocation5 + $0x8] sm:$0xff]  ;;  %v862_v13 = vld [vmem:[#allocation5] sm:$0xff] }
  0x23   :  { %222 = vmatpush.bf16.msra.mxu0 %v868_v1  ;;  %v152_v14 = vld [vmem:[#allocation2] sm:$0xf]  ;;  %v871_v15 = vld [vmem:[#allocation7 + $0x8] sm:$0xff]  ;;  %v870_v16 = vld [vmem:[#allocation7] sm:$0xff] }
  0x24   :  { %305 = vmatpush.bf16.msra.mxu1 %v876_v4  ;;  %v885_v17 = vld [vmem:[#allocation8 + $0x38] sm:$0xff]  ;;  %v884_v18 = vld [vmem:[#allocation8 + $0x30] sm:$0xff]  ;;  %v883_v19 = vld [vmem:[#allocation8 + $0x28] sm:$0xff] }
  0x25   :  { %387 = vmatpush.bf16.msra.mxu2 %v885_v17  ;;  %v882_v20 = vld [vmem:[#allocation8 + $0x20] sm:$0xff]  ;;  %v881_v21 = vld [vmem:[#allocation8 + $0x18] sm:$0xff]  ;;  %v880_v22 = vld [vmem:[#allocation8 + $0x10] sm:$0xff] }
  0x26   :  { %v920_v23 = vld [vmem:[%s1270_s2] ss:$0 sm:$0xff]  ;;  %v879_v29 = vld [vmem:[#allocation8 + $0x8] sm:$0xff]  ;;  %v878_v30 = vld [vmem:[#allocation8] sm:$0xff] }
  0x27   :  { %223 = vmatpush.bf16.msra.mxu0 %v867_v3  ;;  %v893_v31 = vld [vmem:[#allocation10 + $0x38] sm:$0xff]  ;;  %v892_v32 = vld [vmem:[#allocation10 + $0x30] sm:$0xff]  ;;  %v891_v33 = vld [vmem:[#allocation10 + $0x28] sm:$0xff] }
  0x28   :  { %306 = vmatpush.bf16.msra.mxu1 %v875_v5  ;;  %470 = vmatpush.bf16.msra.mxu3 %v893_v31  ;;  %v890_v34 = vld [vmem:[#allocation10 + $0x20] sm:$0xff]  ;;  %v889_v35 = vld [vmem:[#allocation10 + $0x18] sm:$0xff]  ;;  %v888_v36 = vld [vmem:[#allocation10 + $0x10] sm:$0xff] }
  0x29   :  { %388 = vmatpush.bf16.msra.mxu2 %v884_v18  ;;  %v921_v37 = vld [vmem:[%s1272_s4] ss:$0 sm:$0xff]  ;;  %v887_v43 = vld [vmem:[#allocation10 + $0x8] sm:$0xff]  ;;  %v886_v44 = vld [vmem:[#allocation10] sm:$0xff] }
  0x2a   :  { %v901_v45 = vld [vmem:[#allocation11 + $0x38] sm:$0xff]  ;;  %v900_v46 = vld [vmem:[#allocation11 + $0x30] sm:$0xff]  ;;  %v899_v47 = vld [vmem:[#allocation11 + $0x28] sm:$0xff] }
  0x2b   :  { %224 = vmatpush.bf16.msra.mxu0 %v866_v6  ;;  %v898_v48 = vld [vmem:[#allocation11 + $0x20] sm:$0xff]  ;;  %v897_v49 = vld [vmem:[#allocation11 + $0x18] sm:$0xff]  ;;  %v896_v50 = vld [vmem:[#allocation11 + $0x10] sm:$0xff] }
  0x2c   :  { %307 = vmatpush.bf16.msra.mxu1 %v874_v7  ;;  %471 = vmatpush.bf16.msra.mxu3 %v892_v32  ;;  %v922_v51 = vld [vmem:[%s1274_s6] ss:$0 sm:$0xff]  ;;  %v895_v57 = vld [vmem:[#allocation11 + $0x8] sm:$0xff]  ;;  %v894_v58 = vld [vmem:[#allocation11] sm:$0xff] }
  0x2d   :  { %389 = vmatpush.bf16.msra.mxu2 %v883_v19  ;;  %v909_v59 = vld [vmem:[#allocation13 + $0x38] sm:$0xff]  ;;  %v908_v60 = vld [vmem:[#allocation13 + $0x30] sm:$0xff]  ;;  %v907_v61 = vld [vmem:[#allocation13 + $0x28] sm:$0xff] }
  0x2e   :  { %v906_v62 = vld [vmem:[#allocation13 + $0x20] sm:$0xff]  ;;  %v905_v63 = vld [vmem:[#allocation13 + $0x18] sm:$0xff]  ;;  %v904_v0 = vld [vmem:[#allocation13 + $0x10] sm:$0xff] }
  0x2f   :  { %225 = vmatpush.bf16.msra.mxu0 %v865_v8  ;;  %v923_v1 = vld [vmem:[%s1276_s8] ss:$0 sm:$0xff]  ;;  %v903_v7 = vld [vmem:[#allocation13 + $0x8] sm:$0xff]  ;;  %v902_v8 = vld [vmem:[#allocation13] sm:$0xff] }
  0x30   :  { %308 = vmatpush.bf16.msra.mxu1 %v873_v9  ;;  %472 = vmatpush.bf16.msra.mxu3 %v891_v33  ;;  %v924_v9 = vld [vmem:[%s1278_s10] ss:$0 sm:$0xff] }
  0x31   :  { %390 = vmatpush.bf16.msra.mxu2 %v882_v20 }
  0x33   :  { %226 = vmatpush.bf16.msra.mxu0 %v864_v10 }
  0x34   :  { %309 = vmatpush.bf16.msra.mxu1 %v872_v11  ;;  %473 = vmatpush.bf16.msra.mxu3 %v890_v34 }
  0x35   :  { %391 = vmatpush.bf16.msra.mxu2 %v881_v21 }
  0x37   :  { %227 = vmatpush.bf16.msra.mxu0 %v863_v12 }
  0x38   :  { %310 = vmatpush.bf16.msra.mxu1 %v871_v15  ;;  %474 = vmatpush.bf16.msra.mxu3 %v889_v35  ;;  %v925_v15 = vld [vmem:[%s1280_s12] ss:$0 sm:$0xff] }
  0x39   :  { %392 = vmatpush.bf16.msra.mxu2 %v880_v22 }
  0x3b   :  { %228 = vmatpush.bf16.msra.mxu0 %v862_v13 }
  0x3c   :  { %311 = vmatpush.bf16.msra.mxu1 %v870_v16  ;;  %475 = vmatpush.bf16.msra.mxu3 %v888_v36 }
  0x3d   :  { %393 = vmatpush.bf16.msra.mxu2 %v879_v29 }
  0x3e   :  { %229 = vmatmul.bf16.vlgmr.msra.gmra.mxu0 %v152_v14 }
  0x3f   :  { %553 = vmatpush.bf16.msrb.mxu0 %v901_v45 }
  0x40   :  { %476 = vmatpush.bf16.msra.mxu3 %v887_v43  ;;  %636 = vmatpush.bf16.msrb.mxu1 %v909_v59 }
  0x41   :  { %394 = vmatpush.bf16.msra.mxu2 %v878_v30 }
  0x43   :  { %554 = vmatpush.bf16.msrb.mxu0 %v900_v46 }
  0x44   :  { %477 = vmatpush.bf16.msra.mxu3 %v886_v44  ;;  %637 = vmatpush.bf16.msrb.mxu1 %v908_v60 }
  0x47   :  { %555 = vmatpush.bf16.msrb.mxu0 %v899_v47 }
  0x48   :  { %638 = vmatpush.bf16.msrb.mxu1 %v907_v61 }
  0x4b   :  { %556 = vmatpush.bf16.msrb.mxu0 %v898_v48 }
  0x4c   :  { %639 = vmatpush.bf16.msrb.mxu1 %v906_v62 }
  0x4f   :  { %557 = vmatpush.bf16.msrb.mxu0 %v897_v49 }
  0x50   :  { %640 = vmatpush.bf16.msrb.mxu1 %v905_v63 }
  0x53   :  { %558 = vmatpush.bf16.msrb.mxu0 %v896_v50 }
  0x54   :  { %641 = vmatpush.bf16.msrb.mxu1 %v904_v0 }
  0x57   :  { %559 = vmatpush.bf16.msrb.mxu0 %v895_v57 }
  0x58   :  { %642 = vmatpush.bf16.msrb.mxu1 %v903_v7 }
  0x5b   :  { %560 = vmatpush.bf16.msrb.mxu0 %v894_v58 }
  0x5c   :  { %643 = vmatpush.bf16.msrb.mxu1 %v902_v8 }
  0xbb   :  { %v230_v24 = vpop.f32.mrf.mxu0 }
  0xbc   :  { %v231_v25 = vadd.f32 %v920_v23, %v230_v24 }
  0xbe   :  { %v234_v26 = vmax.f32 %v231_v25, 0.0 }
  0xc0   :  { %v235_v27 = vpack.c.bf16 %v234_v26, %v234_v26 }
  0xc2   :  { %312 = vmatmul.bf16.vlgmr.msra.gmra.mxu1 %v235_v27 }
  0xc3   :  { %v232_v28 = vpop.f32.mrf.mxu0 }
 0x13f   :  { %v313_v38 = vpop.f32.mrf.mxu1 }
 0x140   :  { %v314_v39 = vadd.f32 %v921_v37, %v313_v38 }
 0x142   :  { %v317_v40 = vmax.f32 %v314_v39, 0.0 }
 0x144   :  { %v318_v41 = vpack.c.bf16 %v317_v40, %v317_v40 }
 0x146   :  { %395 = vmatmul.bf16.vlgmr.msra.gmra.mxu2 %v318_v41 }
 0x147   :  { %v315_v42 = vpop.f32.mrf.mxu1 }
 0x1c9   :  { %v396_v52 = vpop.f32.mrf.mxu2 }
 0x1ca   :  { %v397_v53 = vadd.f32 %v922_v51, %v396_v52 }
 0x1cc   :  { %v400_v54 = vmax.f32 %v397_v53, 0.0 }
 0x1ce   :  { %v401_v55 = vpack.c.bf16 %v400_v54, %v400_v54 }
 0x1d0   :  { %478 = vmatmul.bf16.vlgmr.msra.gmra.mxu3 %v401_v55 }
 0x1d1   :  { %v398_v56 = vpop.f32.mrf.mxu2 }
 0x253   :  { %v479_v2 = vpop.f32.mrf.mxu3 }
 0x254   :  { %v480_v3 = vadd.f32 %v923_v1, %v479_v2 }
 0x256   :  { %v483_v4 = vmax.f32 %v480_v3, 0.0 }
 0x258   :  { %v484_v5 = vpack.c.bf16 %v483_v4, %v483_v4 }
 0x25a   :  { %561 = vmatmul.bf16.vlgmr.msrb.gmra.mxu0 %v484_v5 }
 0x25b   :  { %v481_v6 = vpop.f32.mrf.mxu3 }
 0x2d7   :  { %v562_v10 = vpop.f32.mrf.mxu0 }
 0x2d8   :  { %v563_v11 = vadd.f32 %v924_v9, %v562_v10 }
 0x2da   :  { %v566_v12 = vmax.f32 %v563_v11, 0.0 }
 0x2dc   :  { %v567_v13 = vpack.c.bf16 %v566_v12, %v566_v12 }
 0x2de   :  { %644 = vmatmul.bf16.vlgmr.msrb.gmra.mxu1 %v567_v13 }
 0x2df   :  { %v564_v14 = vpop.f32.mrf.mxu0 }
 0x35b   :  { %v645_v16 = vpop.f32.mrf.mxu1 }
 0x35c   :  { %v646_v17 = vadd.f32 %v925_v15, %v645_v16 }
 0x35e   :  { %649 = vst [vmem:[#allocation14] sm:$0xff] %v646_v17 }
 0x35f   :  { %660 = dma.vmem_to_hbm [thread:$0]  %s656_s27, 128, %s658_s30, [#allocation4]  }
 0x363   :  { %v647_v18 = vpop.f32.mrf.mxu1 }
 0x364   :  { %1126 = dma.done.wait [#allocation4], 128  }
 0x365   :  { %1127 = vsyncadd [#allocation4], 4294967168 }
 0x366   :  { %665 = vsyncpa [#allocation3], 1 }
 0x367   :  { %666 = vsyncpa [#allocation6], 1 }
 0x368   :  { %667 = vsyncpa [#allocation9], 1 }
 0x369   :  { %668 = vsyncpa [#allocation12], 1 }
 0x36a   :  { %669 = vsyncpa [#allocation4], 1 }

</bundles_post_ra>
